<compile_context>
chip_gen: v7x
topology: tpu7x:2x2x1
jax: 0.10.0
libtpu: 0.0.40
codegen_flags: <defaults>
</compile_context>

<pallas_src>
import math

import jax
import jax.numpy as jnp
from jax import lax
from jax.experimental import pallas as pl
from jax.experimental.pallas import tpu as pltpu


_TN = 8                      # destination-node rows per output tile (sublane friendly)
_CHUNK = 8                   # incoming edges processed per unrolled (masked) chunk
_VMEM_LIMIT = 64 * 1024 * 1024


def _round_up(x, m):
    return (x + m - 1) // m * m


def _prep_kernel(feat_ref, wstack_ref, pcoef_ref, acoef_ref, cconst_ref,
                 nf_ref, w_ref):
    """Dense prep: fused fc transform + Gaussian weights for all edges at once."""
    kp = nf_ref.shape[1]
    fp = nf_ref.shape[2]

    # One wide MXU matmul: (Np, Cin) @ (Cin, Kp*Fp).
    wide = jnp.dot(feat_ref[...], wstack_ref[...],
                   preferred_element_type=jnp.float32)                 # (Np, Kp*Fp)
    for k in range(kp):                                                # static lane slices
        nf_ref[:, k, :] = wide[:, k * fp:(k + 1) * fp]

    # Edge Gaussian weights, vectorized over all edges (quadratic expansion):
    #   dist[e, k] = c[k] + [p, p^2][e, :] @ [-2*mu*s2 ; s2][:, k]
    dist = cconst_ref[...] + jnp.dot(pcoef_ref[...], acoef_ref[...],
                                     preferred_element_type=jnp.float32)   # (Ep, Kp)
    w_ref[...] = jnp.exp(-0.5 * dist)


def _agg_kernel(rowptr_ref, colind_ref,        # scalar prefetch (SMEM)
                nf_ref, w_ref, bias_ref,       # VMEM inputs (resident across tiles)
                out_ref,                       # VMEM output tile (TN, Fp)
                acc_ref):                      # VMEM scratch   (TN, Fp)
    tn = out_ref.shape[0]
    fp = out_ref.shape[1]
    tile = pl.program_id(0)
    bias = bias_ref[...]                       # hoisted: one load/broadcast per tile

    for u in range(tn):                        # static unroll over this tile's dst rows
        node = tile * tn + u
        start = rowptr_ref[node]
        end = rowptr_ref[node + 1]
        n_chunks = (end - start + _CHUNK - 1) // _CHUNK

        def chunk_body(ci, acc):
            base = start + ci * _CHUNK
            for uu in range(_CHUNK):           # unrolled, masked edge chunk
                e = base + uu
                w_row = jnp.where(e < end, w_ref[pl.ds(e, 1), :], 0.0)   # (1, Kp)
                nf_j = nf_ref[colind_ref[e]]                             # (Kp, Fp) gather
                acc = acc + jnp.dot(w_row, nf_j,
                                    preferred_element_type=jnp.float32)  # (1, Fp)
            return acc

        acc_ref[pl.ds(u, 1), :] = lax.fori_loop(
            0, n_chunks, chunk_body, jnp.zeros((1, fp), jnp.float32))

    out_ref[...] = acc_ref[...] + bias         # dense (TN, Fp) store, bias once per tile


def gmm_conv_dgl_forward(rowptr, colind, feat, pseudo, fc_weight, mu, inv_sigma, bias):
    """Forward of GMMConv_dgl (aggregator='sum', residual=False, bias=True)."""
    n, cin = feat.shape
    e, d = pseudo.shape
    k = mu.shape[0]
    f = fc_weight.shape[0] // k

    kp = _round_up(k, 8)
    fp = _round_up(f, 128)
    np_ = _round_up(n, _TN)
    ep = _round_up(e + _CHUNK, 8)       # +_CHUNK: masked chunk over-reads stay in bounds
    dq = _round_up(2 * d, 8)

    f32 = jnp.float32

    # fc weight (K*F, Cin) -> one wide stacked weight (Cin, Kp*Fp); padded k/f cols = 0.
    w3 = jnp.transpose(fc_weight.astype(f32).reshape(k, f, cin), (2, 0, 1))    # (Cin,K,F)
    wstack = jnp.zeros((cin, kp, fp), f32).at[:, :k, :f].set(w3).reshape(cin, kp * fp)

    # Gaussian quadratic-expansion coefficients (no 2 -> 128 padding of the pseudo dim).
    s2 = (inv_sigma.astype(f32) * inv_sigma.astype(f32))                       # (K, D)
    acoef = jnp.zeros((dq, kp), f32)
    acoef = acoef.at[:d, :k].set(jnp.transpose(-2.0 * mu.astype(f32) * s2))
    acoef = acoef.at[d:2 * d, :k].set(jnp.transpose(s2))
    cconst = jnp.zeros((1, kp), f32).at[0, :k].set(jnp.sum(s2 * mu * mu, axis=-1))
    pcoef = jnp.zeros((ep, dq), f32)
    pcoef = pcoef.at[:e, :d].set(pseudo.astype(f32))
    pcoef = pcoef.at[:e, d:2 * d].set(pseudo.astype(f32) * pseudo.astype(f32))

    feat_p = jnp.zeros((np_, cin), f32).at[:n].set(feat.astype(f32))
    bias_p = jnp.zeros((1, fp), f32).at[0, :f].set(bias.astype(f32))
    rowptr_p = jnp.concatenate(
        [rowptr.astype(jnp.int32),
         jnp.full((np_ + 1 - rowptr.shape[0],), rowptr[-1], jnp.int32)])       # (Np+1,)
    colind_p = jnp.zeros((ep,), jnp.int32).at[:e].set(colind.astype(jnp.int32))

    # ---- kernel 1: dense prep (one wide fc matmul + all edge weights) ----
    nf, w_edge = pl.pallas_call(
        _prep_kernel,
        out_shape=(jax.ShapeDtypeStruct((np_, kp, fp), f32),
                   jax.ShapeDtypeStruct((ep, kp), f32)),
        compiler_params=pltpu.CompilerParams(vmem_limit_bytes=_VMEM_LIMIT),
    )(feat_p, wstack, pcoef, acoef, cconst)

    # ---- kernel 2: CSR gather-aggregate, tiled over destination-node tiles ----
    grid_spec = pltpu.PrefetchScalarGridSpec(
        num_scalar_prefetch=2,
        grid=(np_ // _TN,),
        in_specs=[
            pl.BlockSpec((np_, kp, fp), lambda i, rp, ci: (0, 0, 0)),   # nf (resident)
            pl.BlockSpec((ep, kp), lambda i, rp, ci: (0, 0)),           # edge weights
            pl.BlockSpec((1, fp), lambda i, rp, ci: (0, 0)),            # bias
        ],
        out_specs=pl.BlockSpec((_TN, fp), lambda i, rp, ci: (i, 0)),
        scratch_shapes=[pltpu.VMEM((_TN, fp), f32)],
    )
    out_p = pl.pallas_call(
        _agg_kernel,
        out_shape=jax.ShapeDtypeStruct((np_, fp), f32),
        grid_spec=grid_spec,
        compiler_params=pltpu.CompilerParams(
            dimension_semantics=("parallel",),    # dst tiles independent -> v7x megacore
            vmem_limit_bytes=_VMEM_LIMIT),
    )(rowptr_p, colind_p, nf, w_edge, bias_p)

    return out_p[:n, :f]


def reference_forward(rowptr, colind, feat, fc_weight, pseudo, mu, inv_sigma, bias):
    """Pure-JAX reference of the same semantics (for correctness check)."""
    n, _ = feat.shape
    k, _ = mu.shape
    f = fc_weight.shape[0] // k
    e = colind.shape[0]
    node_feat = (feat @ fc_weight.T).reshape(n, k, f)                     # (N, K, F)
    deg = rowptr[1:] - rowptr[:-1]
    dst = jnp.repeat(jnp.arange(n), deg, total_repeat_length=e)
    diff = pseudo[:, None, :] - mu[None, :, :]                            # (E, K, D)
    w = jnp.exp(-0.5 * jnp.sum(diff * diff * (inv_sigma[None, :, :] ** 2), axis=-1))
    msg = w[:, :, None] * node_feat[colind]                               # (E, K, F)
    agg = jnp.zeros((n, k, f), jnp.float32).at[dst].add(msg)
    return agg.sum(axis=1) + bias[None, :]


if __name__ == "__main__":
    N, CIN, FOUT, NKERN, DIM = 16, 32, 32, 4, 2

    # deterministic ring graph: node i receives edges from (i-1)%N, i, (i+1)%N
    deg = 3
    E = N * deg
    rowptr = jnp.arange(N + 1, dtype=jnp.int32) * deg
    srcs = []
    for i in range(N):
        srcs.extend([(i - 1) % N, i, (i + 1) % N])
    colind = jnp.array(srcs, dtype=jnp.int32)

    key = jax.random.PRNGKey(0)
    k_fc, k_mu, k_feat, k_ps = jax.random.split(key, 4)

    # deterministic parameter init mirroring reset_parameters()
    gain = math.sqrt(2.0)                                   # init.calculate_gain('relu')
    std = gain * math.sqrt(2.0 / (CIN + NKERN * FOUT))      # xavier_normal_
    fc_weight = std * jax.random.normal(k_fc, (NKERN * FOUT, CIN), jnp.float32)
    mu = 0.1 * jax.random.normal(k_mu, (NKERN, DIM), jnp.float32)
    inv_sigma = jnp.ones((NKERN, DIM), jnp.float32)
    bias = jnp.zeros((FOUT,), jnp.float32)

    feat = jax.random.normal(k_feat, (N, CIN), jnp.float32)
    pseudo = jax.random.normal(k_ps, (E, DIM), jnp.float32)

    out = gmm_conv_dgl_forward(rowptr, colind, feat, pseudo,
                               fc_weight, mu, inv_sigma, bias)
    out = jax.block_until_ready(out)

    ref = reference_forward(rowptr, colind, feat, fc_weight, pseudo, mu, inv_sigma, bias)
    assert out.shape == (N, FOUT), out.shape
    if not jnp.allclose(out, ref, atol=1e-3, rtol=1e-3):
        err = float(jnp.max(jnp.abs(out - ref)))
        raise AssertionError(
            f"Pallas result does not match JAX reference (max|diff|={err})")
    print("KERNEL_OK")
</pallas_src>

<mosaic_0001>
module attributes {stable_mosaic.version = 11 : i64} {
  func.func @_prep_kernel(%arg0: memref<16x32xf32, #tpu.memory_space<vmem>>, %arg1: memref<32x1024xf32, #tpu.memory_space<vmem>>, %arg2: memref<56x8xf32, #tpu.memory_space<vmem>>, %arg3: memref<8x8xf32, #tpu.memory_space<vmem>>, %arg4: memref<1x8xf32, #tpu.memory_space<vmem>>, %arg5: memref<16x8x128xf32, #tpu.memory_space<vmem>>, %arg6: memref<56x8xf32, #tpu.memory_space<vmem>>) attributes {dimension_semantics = [], scalar_prefetch = 0 : i64, scratch_operands = 0 : i64, tpu.core_type = #tpu.core_type<tc>} {
    %c0 = arith.constant 0 : index
    %c0_0 = arith.constant 0 : index
    %0 = vector.load %arg0[%c0, %c0_0] : memref<16x32xf32, #tpu.memory_space<vmem>>, vector<16x32xf32>
    %c0_1 = arith.constant 0 : index
    %c0_2 = arith.constant 0 : index
    %1 = vector.load %arg1[%c0_1, %c0_2] : memref<32x1024xf32, #tpu.memory_space<vmem>>, vector<32x1024xf32>
    %cst = arith.constant dense<0.000000e+00> : vector<16x1024xf32>
    %2 = tpu.matmul %0, %1, %cst {dimension_numbers = #tpu.dot_dimension_numbers<[1], [0], [0], [1], [0, 0, 1, 1], [], []>} : vector<16x32xf32>, vector<32x1024xf32>, vector<16x1024xf32> -> vector<16x1024xf32>
    %3 = vector.extract_strided_slice %2 {offsets = [0, 0], sizes = [16, 128], strides = [1, 1]} : vector<16x1024xf32> to vector<16x128xf32>
    %c0_3 = arith.constant 0 : index
    %c0_4 = arith.constant 0 : index
    %c0_5 = arith.constant 0 : index
    %4 = vector.load %arg5[%c0_3, %c0_4, %c0_5] : memref<16x8x128xf32, #tpu.memory_space<vmem>>, vector<16x1x128xf32>
    %5 = vector.shape_cast %4 : vector<16x1x128xf32> to vector<16x128xf32>
    %6 = vector.shape_cast %3 : vector<16x128xf32> to vector<16x1x128xf32>
    tpu.vector_store %arg5[%c0_3, %c0_4, %c0_5], %6 {strides = array<i32>} : memref<16x8x128xf32, #tpu.memory_space<vmem>>, vector<16x1x128xf32>,
    %7 = vector.extract_strided_slice %2 {offsets = [0, 128], sizes = [16, 128], strides = [1, 1]} : vector<16x1024xf32> to vector<16x128xf32>
    %c0_6 = arith.constant 0 : index
    %c1 = arith.constant 1 : index
    %c0_7 = arith.constant 0 : index
    %8 = vector.load %arg5[%c0_6, %c1, %c0_7] : memref<16x8x128xf32, #tpu.memory_space<vmem>>, vector<16x1x128xf32>
    %9 = vector.shape_cast %8 : vector<16x1x128xf32> to vector<16x128xf32>
    %10 = vector.shape_cast %7 : vector<16x128xf32> to vector<16x1x128xf32>
    tpu.vector_store %arg5[%c0_6, %c1, %c0_7], %10 {strides = array<i32>} : memref<16x8x128xf32, #tpu.memory_space<vmem>>, vector<16x1x128xf32>,
    %11 = vector.extract_strided_slice %2 {offsets = [0, 256], sizes = [16, 128], strides = [1, 1]} : vector<16x1024xf32> to vector<16x128xf32>
    %c0_8 = arith.constant 0 : index
    %c2 = arith.constant 2 : index
    %c0_9 = arith.constant 0 : index
    %12 = vector.load %arg5[%c0_8, %c2, %c0_9] : memref<16x8x128xf32, #tpu.memory_space<vmem>>, vector<16x1x128xf32>
    %13 = vector.shape_cast %12 : vector<16x1x128xf32> to vector<16x128xf32>
    %14 = vector.shape_cast %11 : vector<16x128xf32> to vector<16x1x128xf32>
    tpu.vector_store %arg5[%c0_8, %c2, %c0_9], %14 {strides = array<i32>} : memref<16x8x128xf32, #tpu.memory_space<vmem>>, vector<16x1x128xf32>,
    %15 = vector.extract_strided_slice %2 {offsets = [0, 384], sizes = [16, 128], strides = [1, 1]} : vector<16x1024xf32> to vector<16x128xf32>
    %c0_10 = arith.constant 0 : index
    %c3 = arith.constant 3 : index
    %c0_11 = arith.constant 0 : index
    %16 = vector.load %arg5[%c0_10, %c3, %c0_11] : memref<16x8x128xf32, #tpu.memory_space<vmem>>, vector<16x1x128xf32>
    %17 = vector.shape_cast %16 : vector<16x1x128xf32> to vector<16x128xf32>
    %18 = vector.shape_cast %15 : vector<16x128xf32> to vector<16x1x128xf32>
    tpu.vector_store %arg5[%c0_10, %c3, %c0_11], %18 {strides = array<i32>} : memref<16x8x128xf32, #tpu.memory_space<vmem>>, vector<16x1x128xf32>,
    %19 = vector.extract_strided_slice %2 {offsets = [0, 512], sizes = [16, 128], strides = [1, 1]} : vector<16x1024xf32> to vector<16x128xf32>
    %c0_12 = arith.constant 0 : index
    %c4 = arith.constant 4 : index
    %c0_13 = arith.constant 0 : index
    %20 = vector.load %arg5[%c0_12, %c4, %c0_13] : memref<16x8x128xf32, #tpu.memory_space<vmem>>, vector<16x1x128xf32>
    %21 = vector.shape_cast %20 : vector<16x1x128xf32> to vector<16x128xf32>
    %22 = vector.shape_cast %19 : vector<16x128xf32> to vector<16x1x128xf32>
    tpu.vector_store %arg5[%c0_12, %c4, %c0_13], %22 {strides = array<i32>} : memref<16x8x128xf32, #tpu.memory_space<vmem>>, vector<16x1x128xf32>,
    %23 = vector.extract_strided_slice %2 {offsets = [0, 640], sizes = [16, 128], strides = [1, 1]} : vector<16x1024xf32> to vector<16x128xf32>
    %c0_14 = arith.constant 0 : index
    %c5 = arith.constant 5 : index
    %c0_15 = arith.constant 0 : index
    %24 = vector.load %arg5[%c0_14, %c5, %c0_15] : memref<16x8x128xf32, #tpu.memory_space<vmem>>, vector<16x1x128xf32>
    %25 = vector.shape_cast %24 : vector<16x1x128xf32> to vector<16x128xf32>
    %26 = vector.shape_cast %23 : vector<16x128xf32> to vector<16x1x128xf32>
    tpu.vector_store %arg5[%c0_14, %c5, %c0_15], %26 {strides = array<i32>} : memref<16x8x128xf32, #tpu.memory_space<vmem>>, vector<16x1x128xf32>,
    %27 = vector.extract_strided_slice %2 {offsets = [0, 768], sizes = [16, 128], strides = [1, 1]} : vector<16x1024xf32> to vector<16x128xf32>
    %c0_16 = arith.constant 0 : index
    %c6 = arith.constant 6 : index
    %c0_17 = arith.constant 0 : index
    %28 = vector.load %arg5[%c0_16, %c6, %c0_17] : memref<16x8x128xf32, #tpu.memory_space<vmem>>, vector<16x1x128xf32>
    %29 = vector.shape_cast %28 : vector<16x1x128xf32> to vector<16x128xf32>
    %30 = vector.shape_cast %27 : vector<16x128xf32> to vector<16x1x128xf32>
    tpu.vector_store %arg5[%c0_16, %c6, %c0_17], %30 {strides = array<i32>} : memref<16x8x128xf32, #tpu.memory_space<vmem>>, vector<16x1x128xf32>,
    %31 = vector.extract_strided_slice %2 {offsets = [0, 896], sizes = [16, 128], strides = [1, 1]} : vector<16x1024xf32> to vector<16x128xf32>
    %c0_18 = arith.constant 0 : index
    %c7 = arith.constant 7 : index
    %c0_19 = arith.constant 0 : index
    %32 = vector.load %arg5[%c0_18, %c7, %c0_19] : memref<16x8x128xf32, #tpu.memory_space<vmem>>, vector<16x1x128xf32>
    %33 = vector.shape_cast %32 : vector<16x1x128xf32> to vector<16x128xf32>
    %34 = vector.shape_cast %31 : vector<16x128xf32> to vector<16x1x128xf32>
    tpu.vector_store %arg5[%c0_18, %c7, %c0_19], %34 {strides = array<i32>} : memref<16x8x128xf32, #tpu.memory_space<vmem>>, vector<16x1x128xf32>,
    %c0_20 = arith.constant 0 : index
    %c0_21 = arith.constant 0 : index
    %35 = vector.load %arg4[%c0_20, %c0_21] : memref<1x8xf32, #tpu.memory_space<vmem>>, vector<1x8xf32>
    %c0_22 = arith.constant 0 : index
    %c0_23 = arith.constant 0 : index
    %36 = vector.load %arg2[%c0_22, %c0_23] : memref<56x8xf32, #tpu.memory_space<vmem>>, vector<56x8xf32>
    %c0_24 = arith.constant 0 : index
    %c0_25 = arith.constant 0 : index
    %37 = vector.load %arg3[%c0_24, %c0_25] : memref<8x8xf32, #tpu.memory_space<vmem>>, vector<8x8xf32>
    %cst_26 = arith.constant dense<0.000000e+00> : vector<56x8xf32>
    %38 = tpu.matmul %36, %37, %cst_26 {dimension_numbers = #tpu.dot_dimension_numbers<[1], [0], [0], [1], [0, 0, 1, 1], [], []>} : vector<56x8xf32>, vector<8x8xf32>, vector<56x8xf32> -> vector<56x8xf32>
    %39 = vector.broadcast %35 : vector<1x8xf32> to vector<56x8xf32>
    %40 = arith.addf %39, %38 : vector<56x8xf32>
    %cst_27 = arith.constant -5.000000e-01 : f32
    %41 = vector.broadcast %cst_27 : f32 to vector<56x8xf32>
    %42 = arith.mulf %41, %40 : vector<56x8xf32>
    %43 = math.exp %42 : vector<56x8xf32>
    %c0_28 = arith.constant 0 : index
    %c0_29 = arith.constant 0 : index
    %44 = vector.load %arg6[%c0_28, %c0_29] : memref<56x8xf32, #tpu.memory_space<vmem>>, vector<56x8xf32>
    tpu.vector_store %arg6[%c0_28, %c0_29], %43 {strides = array<i32>} : memref<56x8xf32, #tpu.memory_space<vmem>>, vector<56x8xf32>,
    return
  }
}

</mosaic_0001>

<bundles_post_ra>
// kernel: tpu_custom_call.1
= control target key start
LH: loop header
LB: loop body
LE: loop exit
PB: predicated region body
PF: predicated region fallthrough
CT: control target
= control target key end

     0   :  { %12 = vsyncpa [#allocation3], 0  ;;  %s2416_s0 = inlined_call_operand.hbm [shape: f32[16,32], index: 0, kind: input, shape index: {}]   ;;  %s2417_s1 = inlined_call_operand.hbm [shape: f32[32,1024], index: 1, kind: input, shape index: {}]   ;;  %s2418_s2 = inlined_call_operand.hbm [shape: f32[56,8], index: 2, kind: input, shape index: {}]   ;;  %s2419_s3 = inlined_call_operand.hbm [shape: f32[8,8], index: 3, kind: input, shape index: {}]   ;;  %s2420_s4 = inlined_call_operand.hbm [shape: f32[1,8], index: 4, kind: input, shape index: {}]   ;;  %s2421_s5 = inlined_call_operand.hbm [shape: f32[16,8,128], index: 5, kind: output, shape index: {0}]   ;;  %s2422_s6 = inlined_call_operand.hbm [shape: f32[56,8], index: 6, kind: output, shape index: {1}]  }
   0x1   :  { %13 = vsyncpa [#allocation6], 0 }
   0x2   :  { %14 = vsyncpa [#allocation9], 0 }
   0x3   :  { %15 = vsyncpa [#allocation4], 0 }
   0x4   :  { %16 = vsyncpa [#allocation13], 0  ;;  %s2037_s21 = smov [#allocation5]   ;;  %s1873_s25 = scalar_lea.hbm %s2417_s1, 4096 }
   0x5   :  { %s34_s22 = sshll.u32 %s2037_s21, 4  ;;  %p1874_p0 = scmp.ne.s32.totalorder %s2417_s1, %s1873_s25  ;;  %s35_s22 = int_to_ptr.vmem [resolvable:$true] %s34_s22 }
   0x6   :  { %p1877_p1 = scmp.lt.u32.totalorder %s1873_s25, %s2417_s1 }
   0x8   :  { %p1879_p2 = pnand %p1877_p1, %p1874_p0 }
   0xa   :  { %1882 = shalt.err (!%p1879_p2)
}
   0xb   :  { %s1883_s30 = scalar_lea.vmem %s35_s22, 4096  ;;  %p1888_p4 = scmp.lt.s32.totalorder %s35_s22, %s35_s22 }
   0xc   :  { %p1884_p3 = scmp.ne.s32.totalorder %s35_s22, %s1883_s30  ;;  %p1889_p5 = scmp.lt.s32.totalorder %s1883_s30, %s1883_s30 }
   0xe   :  { %p1890_p6 = por %p1889_p5, %p1888_p4 }
  0x10   :  { %p1891_p7 = pnand %p1890_p6, %p1884_p3 }
  0x12   :  { %1894 = shalt.err (!%p1891_p7)
}
  0x13   :  { %s2038_s7 = smov 1024   ;;  %s2039_s8 = smov 64  }
  0x14   :  { %40 = dma.hbm_to_vmem [thread:$0]  %s2417_s1, 4096, %s35_s22, [#allocation6], %s2038_s7, %s2038_s7, %s2039_s8  }
  0x15   :  { %s2040_s11 = smov [#allocation8]   ;;  %s2041_s13 = smov [#allocation2]  }
  0x16   :  { %s59_s12 = sshll.u32 %s2040_s11, 4  ;;  %s22_s14 = sshll.u32 %s2041_s13, 4  ;;  %s60_s12 = int_to_ptr.vmem [resolvable:$true] %s59_s12  ;;  %s23_s14 = int_to_ptr.vmem [resolvable:$true] %s22_s14 }
  0x17   :  { %s1895_s17 = scalar_lea.hbm %s2419_s3, 128 }
  0x18   :  { %p1896_p8 = scmp.ne.s32.totalorder %s2419_s3, %s1895_s17  ;;  %p1899_p9 = scmp.lt.u32.totalorder %s1895_s17, %s2419_s3 }
  0x1a   :  { %p1901_p10 = pnand %p1899_p9, %p1896_p8 }
  0x1c   :  { %1904 = shalt.err (!%p1901_p10)
}
  0x1d   :  { %s1905_s1 = scalar_lea.vmem %s60_s12, 128  ;;  %p1910_p12 = scmp.lt.s32.totalorder %s60_s12, %s60_s12 }
  0x1e   :  { %p1906_p11 = scmp.ne.s32.totalorder %s60_s12, %s1905_s1  ;;  %p1911_p13 = scmp.lt.s32.totalorder %s1905_s1, %s1905_s1 }
  0x20   :  { %p1912_p0 = por %p1911_p13, %p1910_p12 }
  0x22   :  { %p1913_p1 = pnand %p1912_p0, %p1906_p11 }
  0x24   :  { %1916 = shalt.err (!%p1913_p1)
}
  0x25   :  { %62 = dma.hbm_to_vmem [thread:$0]  %s2419_s3, 128, %s60_s12, [#allocation9]  }
  0x26   :  { %s1917_s26 = scalar_lea.hbm %s2416_s0, 256 }
  0x27   :  { %p1918_p2 = scmp.ne.s32.totalorder %s2416_s0, %s1917_s26  ;;  %p1921_p3 = scmp.lt.u32.totalorder %s1917_s26, %s2416_s0 }
  0x29   :  { %p1923_p4 = pnand %p1921_p3, %p1918_p2 }
  0x2b   :  { %1926 = shalt.err (!%p1923_p4)
}
  0x2c   :  { %s1927_s7 = scalar_lea.vmem %s23_s14, 256  ;;  %p1932_p6 = scmp.lt.s32.totalorder %s23_s14, %s23_s14 }
  0x2d   :  { %p1928_p5 = scmp.ne.s32.totalorder %s23_s14, %s1927_s7  ;;  %p1933_p7 = scmp.lt.s32.totalorder %s1927_s7, %s1927_s7 }
  0x2f   :  { %p1934_p8 = por %p1933_p7, %p1932_p6 }
  0x31   :  { %p1935_p9 = pnand %p1934_p8, %p1928_p5 }
  0x33   :  { %1938 = shalt.err (!%p1935_p9)
}
  0x34   :  { %s2042_s3 = smov 128   ;;  %s2043_s8 = smov 8  }
  0x35   :  { %28 = dma.hbm_to_vmem [thread:$0]  %s2416_s0, 256, %s23_s14, [#allocation3], %s2042_s3, %s2042_s3, %s2043_s8  }
  0x36   :  { %s2044_s11 = smov [#allocation7]   ;;  %s2045_s13 = smov [#allocation10]  }
  0x37   :  { %s46_s12 = sshll.u32 %s2044_s11, 4  ;;  %s69_s15 = sshll.u32 %s2045_s13, 4  ;;  %s47_s12 = int_to_ptr.vmem [resolvable:$true] %s46_s12  ;;  %s70_s15 = int_to_ptr.vmem [resolvable:$true] %s69_s15 }
  0x38   :  { %s1939_s18 = scalar_lea.hbm %s2418_s2, 896 }
  0x39   :  { %p1940_p10 = scmp.ne.s32.totalorder %s2418_s2, %s1939_s18  ;;  %p1943_p11 = scmp.lt.u32.totalorder %s1939_s18, %s2418_s2 }
  0x3b   :  { %p1945_p12 = pnand %p1943_p11, %p1940_p10 }
  0x3d   :  { %1948 = shalt.err (!%p1945_p12)
}
  0x3e   :  { %s1949_s0 = scalar_lea.vmem %s47_s12, 896  ;;  %p1954_p0 = scmp.lt.s32.totalorder %s47_s12, %s47_s12 }
  0x3f   :  { %p1950_p13 = scmp.ne.s32.totalorder %s47_s12, %s1949_s0  ;;  %p1955_p1 = scmp.lt.s32.totalorder %s1949_s0, %s1949_s0 }
  0x41   :  { %p1956_p2 = por %p1955_p1, %p1954_p0 }
  0x43   :  { %p1957_p3 = pnand %p1956_p2, %p1950_p13 }
  0x45   :  { %1960 = shalt.err (!%p1957_p3)
}
  0x46   :  { %52 = dma.hbm_to_vmem [thread:$0]  %s2418_s2, 896, %s47_s12, [#allocation6], %s2042_s3, %s2042_s3, %s2043_s8  }
  0x47   :  { %s1961_s25 = scalar_lea.hbm %s2420_s4, 16 }
  0x48   :  { %p1962_p4 = scmp.ne.s32.totalorder %s2420_s4, %s1961_s25  ;;  %p1965_p5 = scmp.lt.u32.totalorder %s1961_s25, %s2420_s4 }
  0x4a   :  { %p1967_p6 = pnand %p1965_p5, %p1962_p4 }
  0x4c   :  { %1970 = shalt.err (!%p1967_p6)
}
  0x4d   :  { %s1971_s30 = scalar_lea.vmem %s70_s15, 16  ;;  %s1975_s7 = scalar_lea.vmem %s70_s15, 32 }
  0x4e   :  { %p1972_p7 = scmp.ne.s32.totalorder %s70_s15, %s1971_s30  ;;  %p1976_p8 = scmp.lt.s32.totalorder %s70_s15, %s70_s15 }
  0x4f   :  { %p1977_p9 = scmp.lt.s32.totalorder %s1975_s7, %s1971_s30 }
  0x51   :  { %p1978_p10 = por %p1977_p9, %p1976_p8 }
  0x53   :  { %p1979_p11 = pnand %p1978_p10, %p1972_p7 }
  0x55   :  { %1982 = shalt.err (!%p1979_p11)
}
  0x56   :  { %72 = dma.hbm_to_vmem [thread:$0]  %s2420_s4, 16, %s70_s15, [#allocation9]  }
  0x57   :  { %2027 = dma.done.wait [#allocation3], 256  }
  0x58   :  { %2028 = vsyncadd [#allocation3], 4294967040 }
  0x59   :  { %2029 = dma.done.wait [#allocation6], 4992  }
  0x5a   :  { %2030 = vsyncadd [#allocation6], 4294962304 }
  0x5b   :  { %2031 = dma.done.wait [#allocation9], 144  }
  0x5c   :  { %2032 = vsyncadd [#allocation9], 4294967152  ;;  %v2046_v0 = vmov 0.0   ;;  %v91_v1 = vld [vmem:[#allocation5 + $0x8] sm:$0xff]  ;;  %v90_v3 = vld [vmem:[#allocation5] sm:$0xff]  ;;  %vm122_vm0 = vcmask 261120   ;;  %v443_v61 = vlaneseq }
  0x5d   :  { %193 = vmatprep.mubr.f32.mxu0 %v2046_v0  ;;  %270 = vmatprep.mubr.f32.mxu1 %v2046_v0  ;;  %v99_v2 = vld [vmem:[#allocation5 + $0x48] sm:$0xff]  ;;  %v98_v5 = vld [vmem:[#allocation5 + $0x40] sm:$0xff]  ;;  %v93_v10 = vld [vmem:[#allocation5 + $0x18] sm:$0xff]  ;;  %vm2047_vm1 = vmmov 0   ;;  %vm1502_vm2 = vcmask 64512   ;;  %s2049_s4 = smov [#allocation11]  }
  0x5e   :  { %v1811_v4 = vpack.c.bf16 %v99_v2, %v91_v1  ;;  %v107_v6 = vld [vmem:[#allocation5 + $0x88] sm:$0xff]  ;;  %v1813_v8 = vpack.c.bf16 %v98_v5, %v90_v3  ;;  %v101_v11 = vld [vmem:[#allocation5 + $0x58] sm:$0xff]  ;;  %v106_v12 = vld [vmem:[#allocation5 + $0x80] sm:$0xff]  ;;  %v2048_v59 = vmov 1966171168   ;;  %v444_v63 = vshrl.u32 %v443_v61, 7 }
  0x5f   :  { %v115_v7 = vld [vmem:[#allocation5 + $0xc8] sm:$0xff]  ;;  %v1819_v13 = vpack.c.bf16 %v101_v11, %v93_v10  ;;  %v114_v14 = vld [vmem:[#allocation5 + $0xc0] sm:$0xff]  ;;  %v92_v15 = vld [vmem:[#allocation5 + $0x10] sm:$0xff]  ;;  %v441_v60 = vunpack.c.l.s4 %v2048_v59  ;;  %s1670_s10 = sshll.u32 %s2049_s4, 4  ;;  %s1671_s10 = int_to_ptr.vmem [resolvable:$true] %s1670_s10 }
  0x60   :  { %v1815_v9 = vpack.c.bf16 %v115_v7, %v107_v6  ;;  %1812 = vmatprep.subr.bf16.mxu0 %v1811_v4  ;;  %v100_v16 = vld [vmem:[#allocation5 + $0x50] sm:$0xff]  ;;  %v1817_v17 = vpack.c.bf16 %v114_v14, %v106_v12  ;;  %v109_v19 = vld [vmem:[#allocation5 + $0x98] sm:$0xff]  ;;  %v95_v22 = vld [vmem:[#allocation5 + $0x28] sm:$0xff]  ;;  %s1983_s11 = scalar_lea.vmem %s1671_s10, 2048  ;;  %p1988_p13 = scmp.lt.s32.totalorder %s1671_s10, %s1671_s10 }
  0x61   :  { %1814 = vmatpush1.bf16.msra.mxu0 %v1813_v8  ;;  %v1821_v18 = vpack.c.bf16 %v100_v16, %v92_v15  ;;  %v117_v20 = vld [vmem:[#allocation5 + $0xd8] sm:$0xff]  ;;  %1820 = vmatprep.subr.bf16.mxu1 %v1819_v13  ;;  %v103_v23 = vld [vmem:[#allocation5 + $0x68] sm:$0xff]  ;;  %v108_v24 = vld [vmem:[#allocation5 + $0x90] sm:$0xff]  ;;  %v442_v62 = vunpack.c.0.s8 %v441_v60  ;;  %p1984_p12 = scmp.ne.s32.totalorder %s1671_s10, %s1983_s11  ;;  %p1989_p0 = scmp.lt.s32.totalorder %s1983_s11, %s1983_s11 }
  0x62   :  { %1816 = vmatprep.subr.bf16.mxu0 %v1815_v9  ;;  %v1823_v21 = vpack.c.bf16 %v117_v20, %v109_v19  ;;  %v1827_v25 = vpack.c.bf16 %v103_v23, %v95_v22  ;;  %v116_v26 = vld [vmem:[#allocation5 + $0xd0] sm:$0xff]  ;;  %v94_v27 = vld [vmem:[#allocation5 + $0x20] sm:$0xff]  ;;  %v111_v31 = vld [vmem:[#allocation5 + $0xa8] sm:$0xff] }
  0x63   :  { %1822 = vmatpush1.bf16.msra.mxu1 %v1821_v18  ;;  %v102_v28 = vld [vmem:[#allocation5 + $0x60] sm:$0xff]  ;;  %v88_v29 = vld [vmem:[#allocation2] sm:$0xff]  ;;  %v1825_v30 = vpack.c.bf16 %v116_v26, %v108_v24  ;;  %v119_v32 = vld [vmem:[#allocation5 + $0xe8] sm:$0xff]  ;;  %v2191_v1 = vsub.s32 %v442_v62, %v444_v63  ;;  %p1990_p1 = por %p1989_p0, %p1988_p13 }
  0x64   :  { %1824 = vmatprep.subr.bf16.mxu1 %v1823_v21  ;;  %v1829_v33 = vpack.c.bf16 %v102_v28, %v94_v27  ;;  %v97_v34 = vld [vmem:[#allocation5 + $0x38] sm:$0xff]  ;;  %v110_v36 = vld [vmem:[#allocation5 + $0xa0] sm:$0xff]  ;;  %v1831_v37 = vpack.c.bf16 %v119_v32, %v111_v31  ;;  %v96_v40 = vld [vmem:[#allocation5 + $0x30] sm:$0xff] }
  0x65   :  { %1818 = vmatpush1.bf16.msra.mxu0 %v1817_v17  ;;  %v105_v35 = vld [vmem:[#allocation5 + $0x78] sm:$0xff]  ;;  %v118_v39 = vld [vmem:[#allocation5 + $0xe0] sm:$0xff]  ;;  %v104_v41 = vld [vmem:[#allocation5 + $0x70] sm:$0xff]  ;;  %p1991_p2 = pnand %p1990_p1, %p1984_p12 }
  0x66   :  { %1828 = vmatprep.subr.bf16.mxu0 %v1827_v25  ;;  %v1835_v38 = vpack.c.bf16 %v105_v35, %v97_v34  ;;  %v1837_v42 = vpack.c.bf16 %v104_v41, %v96_v40  ;;  %v113_v43 = vld [vmem:[#allocation5 + $0xb8] sm:$0xff]  ;;  %v112_v46 = vld [vmem:[#allocation5 + $0xb0] sm:$0xff]  ;;  %v1833_v49 = vpack.c.bf16 %v118_v39, %v110_v36  ;;  %v1494_v52 = vld [vmem:[#allocation7] sm:$0xff] }
  0x67   :  { %1826 = vmatpush1.bf16.msra.mxu1 %v1825_v30  ;;  %v121_v44 = vld [vmem:[#allocation5 + $0xf8] sm:$0xff]  ;;  %v120_v47 = vld [vmem:[#allocation5 + $0xf0] sm:$0xff]  ;;  %v1498_v53 = vld [vmem:[#allocation7 + $0x20] sm:$0xff] }
  0x68   :  { %1700 = vmatmul.mubr.msk.f32.vlgmr.msra.gmra.mrb[0].mxu0 %vm122_vm0, %v88_v29  ;;  %1836 = vmatprep.subr.bf16.mxu1 %v1835_v38  ;;  %v1839_v45 = vpack.c.bf16 %v121_v44, %v113_v43  ;;  %v89_v48 = vld [vmem:[#allocation2 + $0x8] sm:$0xff]  ;;  %v1841_v50 = vpack.c.bf16 %v120_v47, %v112_v46  ;;  %v1495_v54 = vld [vmem:[#allocation7 + $0x8] sm:$0xff]  ;;  %v1496_v56 = vld [vmem:[#allocation7 + $0x10] sm:$0xff] }
  0x69   :  { %1830 = vmatpush1.bf16.msra.mxu0 %v1829_v33  ;;  %199 = vmatprep.mubr.f32.mxu0 %v2046_v0  ;;  %v1501_v51 = vld [vmem:[#allocation8] sm:$0xff]  ;;  %v1499_v55 = vld [vmem:[#allocation7 + $0x28] sm:$0xff]  ;;  %v1500_v57 = vld [vmem:[#allocation7 + $0x30] sm:$0xff] }
  0x6a   :  { %1702 = vmatmul.mubr.msk.f32.vlgmr.msra.gmra.mrb[0].mxu1 %vm122_vm0, %v88_v29  ;;  %1832 = vmatprep.subr.bf16.mxu0 %v1831_v37  ;;  %v1497_v58 = vld [vmem:[#allocation7 + $0x18] sm:$0xff] }
  0x6b   :  { %1838 = vmatpush1.bf16.msra.mxu1 %v1837_v42  ;;  %276 = vmatprep.mubr.f32.mxu1 %v2046_v0 }
  0x6c   :  { %1701 = vmatmul.mubr.msk.f32.gmra.mrb[2].mxu0 %vm122_vm0, %v89_v48  ;;  %1840 = vmatprep.subr.bf16.mxu1 %v1839_v45 }
  0x6d   :  { %1834 = vmatpush1.bf16.msra.mxu0 %v1833_v49  ;;  %347 = vmatprep.mubr.f32.mxu0 %v2046_v0 }
  0x6e   :  { %1703 = vmatmul.mubr.msk.f32.gmra.mrb[2].mxu1 %vm122_vm0, %v89_v48  ;;  %1788 = vmatprep.subr.mxu0 %v2046_v0 }
  0x6f   :  { %1842 = vmatpush1.bf16.msra.mxu1 %v1841_v50  ;;  %424 = vmatprep.mubr.f32.mxu1 %v2046_v0 }
  0x70   :  { %1704 = vmatmul.mubr.msk.f32.vlgmr.msra.gmra.mrb[4].mxu0 %vm122_vm0, %v88_v29  ;;  %1843 = vmatprep.subr.mxu1 %v2046_v0 }
  0x71   :  { %1789 = vmatpush3.msra.mxu0 %v1501_v51  ;;  %353 = vmatprep.mubr.f32.mxu0 %v2046_v0 }
  0x72   :  { %1706 = vmatmul.mubr.msk.f32.vlgmr.msra.gmra.mrb[4].mxu1 %vm122_vm0, %v88_v29 }
  0x73   :  { %1844 = vmatpush3.msra.mxu1 %v1501_v51  ;;  %430 = vmatprep.mubr.f32.mxu1 %v2046_v0 }
  0x74   :  { %1705 = vmatmul.mubr.msk.f32.gmra.mrb[6].mxu0 %vm122_vm0, %v89_v48 }
  0x75   :  { %1790 = vmatprep.mubr.msk.f32.mxu0 %vm2047_vm1, %v2046_v0 }
  0x76   :  { %1707 = vmatmul.mubr.msk.f32.gmra.mrb[6].mxu1 %vm122_vm0, %v89_v48 }
  0x77   :  { %1802 = vmatprep.mubr.msk.f32.mxu1 %vm2047_vm1, %v2046_v0 }
  0x78   :  { %1791 = vmatmul.mubr.msk.f32.vlgmr.msra.gmra.mrb[8].mxu0 %vm1502_vm2, %v1494_v52 }
  0x79   :  { %1793 = vmatprep.mubr.msk.f32.mxu0 %vm2047_vm1, %v2046_v0 }
  0x7a   :  { %1803 = vmatmul.mubr.msk.f32.vlgmr.msra.gmra.mrb[8].mxu1 %vm1502_vm2, %v1498_v53 }
  0x7b   :  { %1805 = vmatprep.mubr.msk.f32.mxu1 %vm2047_vm1, %v2046_v0 }
  0x7c   :  { %1794 = vmatmul.mubr.msk.f32.gmra.mrb[10].mxu0 %vm1502_vm2, %v1495_v54 }
  0x7d   :  { %1796 = vmatprep.mubr.msk.f32.mxu0 %vm2047_vm1, %v2046_v0 }
  0x7e   :  { %1806 = vmatmul.mubr.msk.f32.gmra.mrb[10].mxu1 %vm1502_vm2, %v1499_v55 }
  0x7f   :  { %1808 = vmatprep.mubr.msk.f32.mxu1 %vm2047_vm1, %v2046_v0 }
  0x80   :  { %1797 = vmatmul.mubr.msk.f32.gmra.mrb[12].mxu0 %vm1502_vm2, %v1496_v56 }
  0x81   :  { %1799 = vmatprep.mubr.msk.f32.mxu0 %vm2047_vm1, %v2046_v0 }
  0x82   :  { %1809 = vmatmul.mubr.msk.f32.gmra.mrb[12].mxu1 %vm1502_vm2, %v1500_v57 }
  0x84   :  { %1800 = vmatmul.mubr.msk.f32.gmra.mrb[14].mxu0 %vm1502_vm2, %v1497_v58 }
 0x13b   :  { %v195_v2 = vpop.f32.mrb[0].mxu0 }
 0x13c   :  { %v439_v3 = vcombine.high %v195_v2, %v195_v2  ;;  %v446_v4 = vrot.slane %v195_v2, %v2191_v1  ;;  %v197_v5 = vpop.f32.mrb[1].mxu0 }
 0x13d   :  { %v571_v6 = vcombine.high %v197_v5, %v197_v5  ;;  %v578_v0 = vrot.slane %v197_v5, %v2191_v1  ;;  %v272_v7 = vpop.f32.mrb[0].mxu1 }
 0x13e   :  { %v453_v8 = vrot.slane %v439_v3, %v2191_v1  ;;  %v454_v9 = vcombine.high %v446_v4, %v446_v4  ;;  %v462_v10 = vrot.slane %v446_v4, %v2191_v1  ;;  %1708 = vst.sshfl [vmem:[#allocation11] sm:$0x1 pattern:$0x73625140] %v446_v4  ;;  %v703_v11 = vcombine.high %v272_v7, %v272_v7  ;;  %v2197_v12 = vpop.f32.mrb[1].mxu1 }
 0x13f   :  { %v585_v13 = vrot.slane %v571_v6, %v2191_v1  ;;  %v586_v14 = vcombine.high %v578_v0, %v578_v0  ;;  %v594_v15 = vrot.slane %v578_v0, %v2191_v1  ;;  %1716 = vst.sshfl [vmem:[#allocation11 + $0x1] sm:$0x1 pattern:$0x73625140] %v578_v0  ;;  %v201_v16 = vpop.f32.mrb[2].mxu0  ;;  %v710_v17 = vrot.slane %v272_v7, %v2191_v1 }
 0x140   :  { %v455_v18 = vcombine.high %v453_v8, %v453_v8  ;;  %v469_v19 = vrot.slane %v453_v8, %v2191_v1  ;;  %v476_v20 = vrot.slane %v454_v9, %v2191_v1  ;;  %v484_v21 = vcombine.high %v462_v10, %v462_v10  ;;  %1709 = vst.sshfl [vmem:[#allocation11 + $0x8] sm:$0x1 pattern:$0x73625140] %v454_v9  ;;  %v2204_v22 = vpop.f32.mrb[3].mxu0 }
 0x141   :  { %1710 = vst.sshfl [vmem:[#allocation11 + $0x20] sm:$0x1 pattern:$0x73625140] %v453_v8  ;;  %v587_v23 = vcombine.high %v585_v13, %v585_v13  ;;  %v601_v24 = vrot.slane %v585_v13, %v2191_v1  ;;  %v608_v25 = vrot.slane %v586_v14, %v2191_v1  ;;  %v616_v26 = vcombine.high %v594_v15, %v594_v15  ;;  %v2208_v27 = vpop.f32.mrb[2].mxu1 }
 0x142   :  { %1717 = vst.sshfl [vmem:[#allocation11 + $0x9] sm:$0x1 pattern:$0x73625140] %v586_v14  ;;  %v483_v28 = vrot.slane %v455_v18, %v2191_v1  ;;  %v485_v29 = vcombine.high %v469_v19, %v469_v19  ;;  %v486_v30 = vcombine.high %v476_v20, %v476_v20  ;;  %555 = vst [vmem:[#allocation11 + $0x10] sm:$0x1] %v484_v21 }
 0x143   :  { %1718 = vst.sshfl [vmem:[#allocation11 + $0x21] sm:$0x1 pattern:$0x73625140] %v585_v13  ;;  %v488_v31 = vcombine.high %v201_v16, %v201_v16  ;;  %v2211_v32 = vpop.f32.mrb[3].mxu1  ;;  %v615_v33 = vrot.slane %v587_v23, %v2191_v1  ;;  %v617_v34 = vcombine.high %v601_v24, %v601_v24  ;;  %v618_v35 = vcombine.high %v608_v25, %v608_v25  ;;  %v2215_v37 = vpop.f32.mrb[4].mxu0 }
 0x144   :  { %1724 = vst.sshfl [vmem:[#allocation11 + $0x2] sm:$0x1 pattern:$0x73625140] %v710_v17  ;;  %687 = vst [vmem:[#allocation11 + $0x11] sm:$0x1] %v616_v26  ;;  %v495_v36 = vrot.slane %v201_v16, %v2191_v1  ;;  %v487_v38 = vcombine.high %v483_v28, %v483_v28  ;;  %v717_v40 = vrot.slane %v703_v11, %v2191_v1 }
 0x145   :  { %1711 = vst.sshfl [vmem:[#allocation11 + $0x28] sm:$0x1 pattern:$0x73625140] %v455_v18  ;;  %556 = vst [vmem:[#allocation11 + $0x18] sm:$0x1] %v486_v30  ;;  %v502_v39 = vrot.slane %v488_v31, %v2191_v1  ;;  %v718_v41 = vcombine.high %v710_v17, %v710_v17  ;;  %v619_v43 = vcombine.high %v615_v33, %v615_v33 }
 0x146   :  { %1719 = vst.sshfl [vmem:[#allocation11 + $0x29] sm:$0x1 pattern:$0x73625140] %v587_v23  ;;  %559 = vst [vmem:[#allocation11 + $0x30] sm:$0x1] %v485_v29  ;;  %v503_v44 = vcombine.high %v495_v36, %v495_v36  ;;  %v511_v45 = vrot.slane %v495_v36, %v2191_v1  ;;  %v726_v46 = vrot.slane %v710_v17, %v2191_v1 }
 0x147   :  { %v2219_v42 = vpop.f32.mrb[5].mxu0  ;;  %688 = vst [vmem:[#allocation11 + $0x19] sm:$0x1] %v618_v35  ;;  %691 = vst [vmem:[#allocation11 + $0x31] sm:$0x1] %v617_v34  ;;  %v2223_v47 = vpop.f32.mrb[4].mxu1  ;;  %v504_v48 = vcombine.high %v502_v39, %v502_v39  ;;  %v518_v49 = vrot.slane %v502_v39, %v2191_v1  ;;  %v719_v50 = vcombine.high %v717_v40, %v717_v40 }
 0x148   :  { %1712 = vst.sshfl [vmem:[#allocation11 + $0x40] sm:$0x1 pattern:$0x73625140] %v495_v36  ;;  %560 = vst [vmem:[#allocation11 + $0x38] sm:$0x1] %v487_v38  ;;  %v733_v51 = vrot.slane %v717_v40, %v2191_v1  ;;  %v525_v53 = vrot.slane %v503_v44, %v2191_v1  ;;  %v533_v54 = vcombine.high %v511_v45, %v511_v45 }
 0x149   :  { %1714 = vst.sshfl [vmem:[#allocation11 + $0x60] sm:$0x1 pattern:$0x73625140] %v502_v39  ;;  %v2227_v52 = vpop.f32.mrb[5].mxu1  ;;  %v740_v55 = vrot.slane %v718_v41, %v2191_v1  ;;  %v748_v56 = vcombine.high %v726_v46, %v726_v46  ;;  %v2231_v57 = vpop.f32.mrb[6].mxu0  ;;  %v532_v58 = vrot.slane %v504_v48, %v2191_v1  ;;  %v534_v59 = vcombine.high %v518_v49, %v518_v49 }
 0x14a   :  { %1725 = vst.sshfl [vmem:[#allocation11 + $0xa] sm:$0x1 pattern:$0x73625140] %v718_v41  ;;  %692 = vst [vmem:[#allocation11 + $0x39] sm:$0x1] %v619_v43  ;;  %v747_v60 = vrot.slane %v719_v50, %v2191_v1  ;;  %v749_v61 = vcombine.high %v733_v51, %v733_v51  ;;  %v535_v63 = vcombine.high %v525_v53, %v525_v53 }
 0x14b   :  { %1726 = vst.sshfl [vmem:[#allocation11 + $0x22] sm:$0x1 pattern:$0x73625140] %v717_v40  ;;  %v2235_v62 = vpop.f32.mrb[7].mxu0  ;;  %v750_v2 = vcombine.high %v740_v55, %v740_v55  ;;  %v620_v3 = vcombine.high %v2204_v22, %v2204_v22  ;;  %v627_v4 = vrot.slane %v2204_v22, %v2191_v1  ;;  %v2241_v5 = vpop.f32.mrb[6].mxu1  ;;  %v536_v6 = vcombine.high %v532_v58, %v532_v58 }
 0x14c   :  { %1713 = vst.sshfl [vmem:[#allocation11 + $0x48] sm:$0x1 pattern:$0x73625140] %v503_v44  ;;  %563 = vst [vmem:[#allocation11 + $0x50] sm:$0x1] %v533_v54  ;;  %v751_v0 = vcombine.high %v747_v60, %v747_v60  ;;  %v835_v7 = vcombine.high %v2197_v12, %v2197_v12  ;;  %v842_v8 = vrot.slane %v2197_v12, %v2191_v1 }
 0x14d   :  { %1715 = vst.sshfl [vmem:[#allocation11 + $0x68] sm:$0x1 pattern:$0x73625140] %v504_v48  ;;  %819 = vst [vmem:[#allocation11 + $0x12] sm:$0x1] %v748_v56  ;;  %v634_v10 = vrot.slane %v620_v3, %v2191_v1  ;;  %v635_v11 = vcombine.high %v627_v4, %v627_v4  ;;  %v643_v13 = vrot.slane %v627_v4, %v2191_v1 }
 0x14e   :  { %1727 = vst.sshfl [vmem:[#allocation11 + $0x2a] sm:$0x1 pattern:$0x73625140] %v719_v50  ;;  %567 = vst [vmem:[#allocation11 + $0x70] sm:$0x1] %v534_v59  ;;  %v752_v14 = vcombine.high %v2208_v27, %v2208_v27  ;;  %v849_v16 = vrot.slane %v835_v7, %v2191_v1  ;;  %v850_v12 = vcombine.high %v842_v8, %v842_v8 }
 0x14f   :  { %823 = vst [vmem:[#allocation11 + $0x32] sm:$0x1] %v749_v61  ;;  %v2247_v9 = vpop.f32.mrb[7].mxu1  ;;  %564 = vst [vmem:[#allocation11 + $0x58] sm:$0x1] %v535_v63  ;;  %v2253_v15 = vpop.f32.mrb[8].mxu0  ;;  %v858_v17 = vrot.slane %v842_v8, %v2191_v1  ;;  %v759_v18 = vrot.slane %v2208_v27, %v2191_v1  ;;  %v636_v20 = vcombine.high %v634_v10, %v634_v10 }
 0x150   :  { %820 = vst [vmem:[#allocation11 + $0x1a] sm:$0x1] %v750_v2  ;;  %1720 = vst.sshfl [vmem:[#allocation11 + $0x41] sm:$0x1 pattern:$0x73625140] %v627_v4  ;;  %v650_v21 = vrot.slane %v634_v10, %v2191_v1  ;;  %v657_v22 = vrot.slane %v635_v11, %v2191_v1  ;;  %v665_v23 = vcombine.high %v643_v13, %v643_v13 }
 0x151   :  { %568 = vst [vmem:[#allocation11 + $0x78] sm:$0x1] %v536_v6  ;;  %824 = vst [vmem:[#allocation11 + $0x3a] sm:$0x1] %v751_v0  ;;  %v1792_v19 = vpop.f32.mrb[9].mxu0  ;;  %v2261_v24 = vpop.f32.mrb[8].mxu1  ;;  %v851_v25 = vcombine.high %v849_v16, %v849_v16  ;;  %v865_v26 = vrot.slane %v849_v16, %v2191_v1  ;;  %v872_v28 = vrot.slane %v850_v12, %v2191_v1 }
 0x152   :  { %1732 = vst.sshfl [vmem:[#allocation11 + $0x3] sm:$0x1 pattern:$0x73625140] %v842_v8  ;;  %v880_v29 = vcombine.high %v858_v17, %v858_v17  ;;  %v1804_v27 = vpop.f32.mrb[9].mxu1  ;;  %v664_v30 = vrot.slane %v636_v20, %v2191_v1  ;;  %v666_v31 = vcombine.high %v650_v21, %v650_v21  ;;  %v667_v33 = vcombine.high %v657_v22, %v657_v22  ;;  %v2267_v35 = vpop.f32.mrb[10].mxu0 }
 0x153   :  { %1721 = vst.sshfl [vmem:[#allocation11 + $0x49] sm:$0x1 pattern:$0x73625140] %v635_v11  ;;  %695 = vst [vmem:[#allocation11 + $0x51] sm:$0x1] %v665_v23  ;;  %v766_v34 = vrot.slane %v752_v14, %v2191_v1  ;;  %v879_v36 = vrot.slane %v851_v25, %v2191_v1  ;;  %v881_v38 = vcombine.high %v865_v26, %v865_v26 }
 0x154   :  { %1722 = vst.sshfl [vmem:[#allocation11 + $0x61] sm:$0x1 pattern:$0x73625140] %v634_v10  ;;  %v882_v39 = vcombine.high %v872_v28, %v872_v28  ;;  %951 = vst [vmem:[#allocation11 + $0x13] sm:$0x1] %v880_v29  ;;  %v767_v40 = vcombine.high %v759_v18, %v759_v18  ;;  %v668_v43 = vcombine.high %v664_v30, %v664_v30 }
 0x155   :  { %1733 = vst.sshfl [vmem:[#allocation11 + $0xb] sm:$0x1 pattern:$0x73625140] %v850_v12  ;;  %v1795_v41 = vpop.f32.mrb[11].mxu0  ;;  %v768_v44 = vcombine.high %v766_v34, %v766_v34  ;;  %v775_v45 = vrot.slane %v759_v18, %v2191_v1  ;;  %v782_v46 = vrot.slane %v766_v34, %v2191_v1  ;;  %v2272_v48 = vpop.f32.mrb[10].mxu1  ;;  %v883_v49 = vcombine.high %v879_v36, %v879_v36 }
 0x156   :  { %1734 = vst.sshfl [vmem:[#allocation11 + $0x23] sm:$0x1 pattern:$0x73625140] %v849_v16  ;;  %696 = vst [vmem:[#allocation11 + $0x59] sm:$0x1] %v667_v33  ;;  %v789_v50 = vrot.slane %v767_v40, %v2191_v1  ;;  %v967_v51 = vcombine.high %v2215_v37, %v2215_v37  ;;  %v974_v53 = vrot.slane %v2215_v37, %v2191_v1 }
 0x157   :  { %1728 = vst.sshfl [vmem:[#allocation11 + $0x42] sm:$0x1 pattern:$0x73625140] %v759_v18  ;;  %699 = vst [vmem:[#allocation11 + $0x71] sm:$0x1] %v666_v31  ;;  %v796_v55 = vrot.slane %v768_v44, %v2191_v1  ;;  %v797_v56 = vcombine.high %v775_v45, %v775_v45  ;;  %v798_v58 = vcombine.high %v782_v46, %v782_v46 }
 0x158   :  { %1723 = vst.sshfl [vmem:[#allocation11 + $0x69] sm:$0x1 pattern:$0x73625140] %v636_v20  ;;  %952 = vst [vmem:[#allocation11 + $0x1b] sm:$0x1] %v882_v39  ;;  %v884_v59 = vcombine.high %v2211_v32, %v2211_v32  ;;  %v799_v61 = vcombine.high %v789_v50, %v789_v50  ;;  %v981_v63 = vrot.slane %v967_v51, %v2191_v1 }
 0x159   :  { %1735 = vst.sshfl [vmem:[#allocation11 + $0x2b] sm:$0x1 pattern:$0x73625140] %v851_v25  ;;  %955 = vst [vmem:[#allocation11 + $0x33] sm:$0x1] %v881_v38  ;;  %v982_v2 = vcombine.high %v974_v53, %v974_v53  ;;  %v990_v3 = vrot.slane %v974_v53, %v2191_v1  ;;  %v800_v4 = vcombine.high %v796_v55, %v796_v55 }
 0x15a   :  { %1730 = vst.sshfl [vmem:[#allocation11 + $0x62] sm:$0x1 pattern:$0x73625140] %v766_v34  ;;  %v1807_v54 = vpop.f32.mrb[11].mxu1  ;;  %v2282_v60 = vpop.f32.mrb[12].mxu0  ;;  %v891_v6 = vrot.slane %v2211_v32, %v2191_v1  ;;  %v898_v0 = vrot.slane %v884_v59, %v2191_v1  ;;  %v1099_v7 = vcombine.high %v2219_v42, %v2219_v42  ;;  %v983_v10 = vcombine.high %v981_v63, %v981_v63 }
 0x15b   :  { %1729 = vst.sshfl [vmem:[#allocation11 + $0x4a] sm:$0x1 pattern:$0x73625140] %v767_v40  ;;  %700 = vst [vmem:[#allocation11 + $0x79] sm:$0x1] %v668_v43  ;;  %v997_v11 = vrot.slane %v981_v63, %v2191_v1  ;;  %v1004_v13 = vrot.slane %v982_v2, %v2191_v1  ;;  %v1012_v14 = vcombine.high %v990_v3, %v990_v3 }
 0x15c   :  { %1731 = vst.sshfl [vmem:[#allocation11 + $0x6a] sm:$0x1 pattern:$0x73625140] %v768_v44  ;;  %956 = vst [vmem:[#allocation11 + $0x3b] sm:$0x1] %v883_v49  ;;  %v899_v12 = vcombine.high %v891_v6, %v891_v6  ;;  %v900_v32 = vcombine.high %v898_v0, %v898_v0  ;;  %v907_v17 = vrot.slane %v891_v6, %v2191_v1 }
 0x15d   :  { %1740 = vst.sshfl [vmem:[#allocation11 + $0x4] sm:$0x1 pattern:$0x73625140] %v974_v53  ;;  %v1798_v37 = vpop.f32.mrb[13].mxu0  ;;  %v2291_v8 = vpop.f32.mrb[12].mxu1  ;;  %v914_v18 = vrot.slane %v898_v0, %v2191_v1  ;;  %v1011_v20 = vrot.slane %v983_v10, %v2191_v1  ;;  %v1013_v21 = vcombine.high %v997_v11, %v997_v11  ;;  %v1014_v22 = vcombine.high %v1004_v13, %v1004_v13 }
 0x15e   :  { %827 = vst [vmem:[#allocation11 + $0x52] sm:$0x1] %v797_v56  ;;  %831 = vst [vmem:[#allocation11 + $0x72] sm:$0x1] %v798_v58  ;;  %v1810_v16 = vpop.f32.mrb[13].mxu1  ;;  %v2297_v19 = vpop.f32.mrb[14].mxu0  ;;  %v1106_v23 = vrot.slane %v2219_v42, %v2191_v1  ;;  %v921_v26 = vrot.slane %v899_v12, %v2191_v1  ;;  %v928_v28 = vrot.slane %v900_v32, %v2191_v1 }
 0x15f   :  { %828 = vst [vmem:[#allocation11 + $0x5a] sm:$0x1] %v799_v61  ;;  %1741 = vst.sshfl [vmem:[#allocation11 + $0xc] sm:$0x1 pattern:$0x73625140] %v982_v2  ;;  %v929_v29 = vcombine.high %v907_v17, %v907_v17  ;;  %v930_v27 = vcombine.high %v914_v18, %v914_v18  ;;  %v1015_v30 = vcombine.high %v1011_v20, %v1011_v20 }
 0x160   :  { %1742 = vst.sshfl [vmem:[#allocation11 + $0x24] sm:$0x1 pattern:$0x73625140] %v981_v63  ;;  %832 = vst [vmem:[#allocation11 + $0x7a] sm:$0x1] %v800_v4  ;;  %v1113_v31 = vrot.slane %v1099_v7, %v2191_v1  ;;  %v1114_v33 = vcombine.high %v1106_v23, %v1106_v23  ;;  %v1122_v34 = vrot.slane %v1106_v23, %v2191_v1 }
 0x161   :  { %1736 = vst.sshfl [vmem:[#allocation11 + $0x43] sm:$0x1 pattern:$0x73625140] %v891_v6  ;;  %1083 = vst [vmem:[#allocation11 + $0x14] sm:$0x1] %v1012_v14  ;;  %v931_v36 = vcombine.high %v921_v26, %v921_v26  ;;  %v932_v42 = vcombine.high %v928_v28, %v928_v28  ;;  %v1016_v38 = vcombine.high %v2231_v57, %v2231_v57 }
 0x162   :  { %1738 = vst.sshfl [vmem:[#allocation11 + $0x63] sm:$0x1 pattern:$0x73625140] %v898_v0  ;;  %v1801_v25 = vpop.f32.mrb[15].mxu0  ;;  %v1023_v39 = vrot.slane %v2231_v57, %v2191_v1  ;;  %v1115_v40 = vcombine.high %v1113_v31, %v1113_v31  ;;  %v1129_v41 = vrot.slane %v1113_v31, %v2191_v1  ;;  %v1136_v43 = vrot.slane %v1114_v33, %v2191_v1 }
 0x163   :  { %1743 = vst.sshfl [vmem:[#allocation11 + $0x2c] sm:$0x1 pattern:$0x73625140] %v983_v10  ;;  %1084 = vst [vmem:[#allocation11 + $0x1c] sm:$0x1] %v1014_v22  ;;  %v1144_v44 = vcombine.high %v1122_v34, %v1122_v34  ;;  %v1030_v45 = vrot.slane %v1016_v38, %v2191_v1  ;;  %v1231_v57 = vcombine.high %v2223_v47, %v2223_v47 }
 0x164   :  { %1737 = vst.sshfl [vmem:[#allocation11 + $0x4b] sm:$0x1 pattern:$0x73625140] %v899_v12  ;;  %1087 = vst [vmem:[#allocation11 + $0x34] sm:$0x1] %v1013_v21  ;;  %v1031_v46 = vcombine.high %v1023_v39, %v1023_v39  ;;  %v1039_v49 = vrot.slane %v1023_v39, %v2191_v1  ;;  %v1143_v50 = vrot.slane %v1115_v40, %v2191_v1 }
 0x165   :  { %1739 = vst.sshfl [vmem:[#allocation11 + $0x6b] sm:$0x1 pattern:$0x73625140] %v900_v32  ;;  %959 = vst [vmem:[#allocation11 + $0x53] sm:$0x1] %v929_v29  ;;  %v1145_v51 = vcombine.high %v1129_v41, %v1129_v41  ;;  %v1146_v53 = vcombine.high %v1136_v43, %v1136_v43  ;;  %v1238_v54 = vrot.slane %v2223_v47, %v2191_v1 }
 0x166   :  { %1748 = vst.sshfl [vmem:[#allocation11 + $0x5] sm:$0x1 pattern:$0x73625140] %v1106_v23  ;;  %963 = vst [vmem:[#allocation11 + $0x73] sm:$0x1] %v930_v27  ;;  %v1032_v55 = vcombine.high %v1030_v45, %v1030_v45  ;;  %v1046_v56 = vrot.slane %v1030_v45, %v2191_v1  ;;  %v1053_v58 = vrot.slane %v1031_v46, %v2191_v1 }
 0x167   :  { %1088 = vst [vmem:[#allocation11 + $0x3c] sm:$0x1] %v1015_v30  ;;  %1749 = vst.sshfl [vmem:[#allocation11 + $0xd] sm:$0x1 pattern:$0x73625140] %v1114_v33  ;;  %v1061_v59 = vcombine.high %v1039_v49, %v1039_v49  ;;  %v1147_v61 = vcombine.high %v1143_v50, %v1143_v50  ;;  %v1245_v63 = vrot.slane %v1231_v57, %v2191_v1 }
 0x168   :  { %1750 = vst.sshfl [vmem:[#allocation11 + $0x25] sm:$0x1 pattern:$0x73625140] %v1113_v31  ;;  %960 = vst [vmem:[#allocation11 + $0x5b] sm:$0x1] %v931_v36  ;;  %v1246_v2 = vcombine.high %v1238_v54, %v1238_v54  ;;  %v1254_v3 = vrot.slane %v1238_v54, %v2191_v1  ;;  %v1060_v37 = vrot.slane %v1032_v55, %v2191_v1 }
 0x169   :  { %964 = vst [vmem:[#allocation11 + $0x7b] sm:$0x1] %v932_v42  ;;  %1744 = vst.sshfl [vmem:[#allocation11 + $0x44] sm:$0x1 pattern:$0x73625140] %v1023_v39  ;;  %v1062_v47 = vcombine.high %v1046_v56, %v1046_v56  ;;  %v1063_v4 = vcombine.high %v1053_v58, %v1053_v58  ;;  %v1148_v6 = vcombine.high %v2235_v62, %v2235_v62 }
 0x16a   :  { %1215 = vst [vmem:[#allocation11 + $0x15] sm:$0x1] %v1144_v44  ;;  %1751 = vst.sshfl [vmem:[#allocation11 + $0x2d] sm:$0x1 pattern:$0x73625140] %v1115_v40  ;;  %v1247_v0 = vcombine.high %v1245_v63, %v1245_v63  ;;  %v1261_v7 = vrot.slane %v1245_v63, %v2191_v1  ;;  %v1268_v10 = vrot.slane %v1246_v2, %v2191_v1 }
 0x16b   :  { %1745 = vst.sshfl [vmem:[#allocation11 + $0x4c] sm:$0x1 pattern:$0x73625140] %v1031_v46  ;;  %1216 = vst [vmem:[#allocation11 + $0x1d] sm:$0x1] %v1146_v53  ;;  %v1276_v11 = vcombine.high %v1254_v3, %v1254_v3  ;;  %v1064_v13 = vcombine.high %v1060_v37, %v1060_v37  ;;  %v1155_v14 = vrot.slane %v2235_v62, %v2191_v1 }
 0x16c   :  { %1746 = vst.sshfl [vmem:[#allocation11 + $0x64] sm:$0x1 pattern:$0x73625140] %v1030_v45  ;;  %1219 = vst [vmem:[#allocation11 + $0x35] sm:$0x1] %v1145_v51  ;;  %v1162_v16 = vrot.slane %v1148_v6, %v2191_v1  ;;  %v1363_v12 = vcombine.high %v2227_v52, %v2227_v52  ;;  %v1275_v32 = vrot.slane %v1247_v0, %v2191_v1 }
 0x16d   :  { %1756 = vst.sshfl [vmem:[#allocation11 + $0x6] sm:$0x1 pattern:$0x73625140] %v1238_v54  ;;  %1091 = vst [vmem:[#allocation11 + $0x54] sm:$0x1] %v1061_v59  ;;  %v1277_v17 = vcombine.high %v1261_v7, %v1261_v7  ;;  %v1278_v18 = vcombine.high %v1268_v10, %v1268_v10  ;;  %v1370_v20 = vrot.slane %v2227_v52, %v2191_v1 }
 0x16e   :  { %1747 = vst.sshfl [vmem:[#allocation11 + $0x6c] sm:$0x1 pattern:$0x73625140] %v1032_v55  ;;  %1220 = vst [vmem:[#allocation11 + $0x3d] sm:$0x1] %v1147_v61  ;;  %v1163_v21 = vcombine.high %v1155_v14, %v1155_v14  ;;  %v1164_v22 = vcombine.high %v1162_v16, %v1162_v16  ;;  %v1171_v23 = vrot.slane %v1155_v14, %v2191_v1 }
 0x16f   :  { %1757 = vst.sshfl [vmem:[#allocation11 + $0xe] sm:$0x1 pattern:$0x73625140] %v1246_v2  ;;  %1092 = vst [vmem:[#allocation11 + $0x5c] sm:$0x1] %v1063_v4  ;;  %v1178_v62 = vrot.slane %v1162_v16, %v2191_v1  ;;  %v1279_v25 = vcombine.high %v1275_v32, %v1275_v32  ;;  %v1377_v26 = vrot.slane %v1363_v12, %v2191_v1 }
 0x170   :  { %1758 = vst.sshfl [vmem:[#allocation11 + $0x26] sm:$0x1 pattern:$0x73625140] %v1245_v63  ;;  %1095 = vst [vmem:[#allocation11 + $0x74] sm:$0x1] %v1062_v47  ;;  %v1378_v28 = vcombine.high %v1370_v20, %v1370_v20  ;;  %v1386_v29 = vrot.slane %v1370_v20, %v2191_v1  ;;  %v1185_v52 = vrot.slane %v1163_v21, %v2191_v1 }
 0x171   :  { %1347 = vst [vmem:[#allocation11 + $0x16] sm:$0x1] %v1276_v11  ;;  %1759 = vst.sshfl [vmem:[#allocation11 + $0x2e] sm:$0x1 pattern:$0x73625140] %v1247_v0  ;;  %v1192_v27 = vrot.slane %v1164_v22, %v2191_v1  ;;  %v1193_v30 = vcombine.high %v1171_v23, %v1171_v23  ;;  %v1194_v31 = vcombine.high %v1178_v62, %v1178_v62 }
 0x172   :  { %1096 = vst [vmem:[#allocation11 + $0x7c] sm:$0x1] %v1064_v13  ;;  %1752 = vst.sshfl [vmem:[#allocation11 + $0x45] sm:$0x1 pattern:$0x73625140] %v1155_v14  ;;  %v1379_v34 = vcombine.high %v1377_v26, %v1377_v26  ;;  %v1393_v36 = vrot.slane %v1377_v26, %v2191_v1  ;;  %v1400_v42 = vrot.slane %v1378_v28, %v2191_v1 }
 0x173   :  { %1754 = vst.sshfl [vmem:[#allocation11 + $0x65] sm:$0x1 pattern:$0x73625140] %v1162_v16  ;;  %1348 = vst [vmem:[#allocation11 + $0x1e] sm:$0x1] %v1278_v18  ;;  %v1408_v38 = vcombine.high %v1386_v29, %v1386_v29  ;;  %v1195_v39 = vcombine.high %v1185_v52, %v1185_v52  ;;  %v1196_v40 = vcombine.high %v1192_v27, %v1192_v27 }
 0x174   :  { %1351 = vst [vmem:[#allocation11 + $0x36] sm:$0x1] %v1277_v17  ;;  %1764 = vst.sshfl [vmem:[#allocation11 + $0x7] sm:$0x1 pattern:$0x73625140] %v1370_v20  ;;  %v1280_v41 = vcombine.high %v2241_v5, %v2241_v5  ;;  %v1287_v43 = vrot.slane %v2241_v5, %v2191_v1  ;;  %v1407_v44 = vrot.slane %v1379_v34, %v2191_v1 }
 0x175   :  { %1753 = vst.sshfl [vmem:[#allocation11 + $0x4d] sm:$0x1 pattern:$0x73625140] %v1163_v21  ;;  %v2342_v33 = vld [vmem:[#allocation10] ss:$0 sm:$0xff]  ;;  %v1409_v45 = vcombine.high %v1393_v36, %v1393_v36  ;;  %v1410_v46 = vcombine.high %v1400_v42, %v1400_v42  ;;  %v1412_v5 = vcombine.high %v2247_v9, %v2247_v9  ;;  %v1419_v55 = vrot.slane %v2247_v9, %v2191_v1 }
 0x176   :  { %1755 = vst.sshfl [vmem:[#allocation11 + $0x6d] sm:$0x1 pattern:$0x73625140] %v1164_v22  ;;  %1352 = vst [vmem:[#allocation11 + $0x3e] sm:$0x1] %v1279_v25  ;;  %v1630_v49 = vadd.f32 %v2342_v33, %v2253_v15  ;;  %v1294_v57 = vrot.slane %v1280_v41, %v2191_v1  ;;  %v1295_v50 = vcombine.high %v1287_v43, %v1287_v43 }
 0x177   :  { %1765 = vst.sshfl [vmem:[#allocation11 + $0xf] sm:$0x1 pattern:$0x73625140] %v1378_v28  ;;  %1223 = vst [vmem:[#allocation11 + $0x55] sm:$0x1] %v1193_v30  ;;  %v1303_v51 = vrot.slane %v1287_v43, %v2191_v1  ;;  %v1411_v53 = vcombine.high %v1407_v44, %v1407_v44  ;;  %v1631_v15 = vadd.f32 %v2342_v33, %v2267_v35 }
 0x178   :  { %1766 = vst.sshfl [vmem:[#allocation11 + $0x27] sm:$0x1 pattern:$0x73625140] %v1377_v26  ;;  %1227 = vst [vmem:[#allocation11 + $0x75] sm:$0x1] %v1194_v31  ;;  %v1296_v56 = vcombine.high %v1294_v57, %v1294_v57  ;;  %v1310_v58 = vrot.slane %v1294_v57, %v2191_v1  ;;  %v1317_v59 = vrot.slane %v1295_v50, %v2191_v1 }
 0x179   :  { %1479 = vst [vmem:[#allocation11 + $0x17] sm:$0x1] %v1408_v38  ;;  %1767 = vst.sshfl [vmem:[#allocation11 + $0x2f] sm:$0x1 pattern:$0x73625140] %v1379_v34  ;;  %v1325_v61 = vcombine.high %v1303_v51, %v1303_v51  ;;  %v1426_v2 = vrot.slane %v1412_v5, %v2191_v1  ;;  %v1427_v3 = vcombine.high %v1419_v55, %v1419_v55 }
 0x17a   :  { %1224 = vst [vmem:[#allocation11 + $0x5d] sm:$0x1] %v1195_v39  ;;  %1228 = vst [vmem:[#allocation11 + $0x7d] sm:$0x1] %v1196_v40  ;;  %v1637_v54 = vmul.f32 -0.5, %v1630_v49  ;;  %v1435_v37 = vrot.slane %v1419_v55, %v2191_v1  ;;  %v1324_v9 = vrot.slane %v1296_v56, %v2191_v1  ;;  %v1326_v47 = vcombine.high %v1310_v58, %v1310_v58 }
 0x17b   :  { %1760 = vst.sshfl [vmem:[#allocation11 + $0x46] sm:$0x1 pattern:$0x73625140] %v1287_v43  ;;  %1480 = vst [vmem:[#allocation11 + $0x1f] sm:$0x1] %v1410_v46  ;;  %v1327_v35 = vcombine.high %v1317_v59, %v1317_v59  ;;  %v1428_v6 = vcombine.high %v1426_v2, %v1426_v2  ;;  %v1442_v0 = vrot.slane %v1426_v2, %v2191_v1 }
 0x17c   :  { %1483 = vst [vmem:[#allocation11 + $0x37] sm:$0x1] %v1409_v45  ;;  %1761 = vst.sshfl [vmem:[#allocation11 + $0x4e] sm:$0x1 pattern:$0x73625140] %v1295_v50  ;;  %v1449_v7 = vrot.slane %v1427_v3, %v2191_v1  ;;  %v1328_v10 = vcombine.high %v1324_v9, %v1324_v9  ;;  %v1457_v11 = vcombine.high %v1435_v37, %v1435_v37 }
 0x17d   :  { %1762 = vst.sshfl [vmem:[#allocation11 + $0x66] sm:$0x1 pattern:$0x73625140] %v1294_v57  ;;  %1484 = vst [vmem:[#allocation11 + $0x3f] sm:$0x1] %v1411_v53  ;;  %v1634_v14 = vadd.f32 %v2342_v33, %v2261_v24  ;;  %v1456_v16 = vrot.slane %v1428_v6, %v2191_v1  ;;  %v1458_v12 = vcombine.high %v1442_v0, %v1442_v0 }
 0x17e   :  { %v1644_v63 = vmul.f32 1.442695, %v1637_v54  ;;  %1768 = vst.sshfl [vmem:[#allocation11 + $0x47] sm:$0x1 pattern:$0x73625140] %v1419_v55  ;;  %v1459_v32 = vcombine.high %v1449_v7, %v1449_v7  ;;  %v1632_v17 = vadd.f32 %v2342_v33, %v2282_v60  ;;  %v1635_v20 = vadd.f32 %v2342_v33, %v2272_v48 }
 0x17f   :  { %1355 = vst [vmem:[#allocation11 + $0x56] sm:$0x1] %v1325_v61  ;;  %1763 = vst.sshfl [vmem:[#allocation11 + $0x6e] sm:$0x1 pattern:$0x73625140] %v1296_v56  ;;  %v1633_v24 = vadd.f32 %v2342_v33, %v2297_v19  ;;  %v1460_v21 = vcombine.high %v1456_v16, %v1456_v16  ;;  %v1636_v22 = vadd.f32 %v2342_v33, %v2291_v8 }
 0x180   :  { %v1638_v4 = vmul.f32 -0.5, %v1631_v15  ;;  %1859 = vpow2.f32 %v1644_v63  ;;  %1769 = vst.sshfl [vmem:[#allocation11 + $0x4f] sm:$0x1 pattern:$0x73625140] %v1427_v3  ;;  %v1641_v18 = vmul.f32 -0.5, %v1634_v14 }
 0x181   :  { %1770 = vst.sshfl [vmem:[#allocation11 + $0x67] sm:$0x1 pattern:$0x73625140] %v1426_v2  ;;  %1356 = vst [vmem:[#allocation11 + $0x5e] sm:$0x1] %v1327_v35 }
 0x182   :  { %1359 = vst [vmem:[#allocation11 + $0x76] sm:$0x1] %v1326_v47  ;;  %v1646_v13 = vmul.f32 1.442695, %v1638_v4  ;;  %1360 = vst [vmem:[#allocation11 + $0x7e] sm:$0x1] %v1328_v10 }
 0x183   :  { %1771 = vst.sshfl [vmem:[#allocation11 + $0x6f] sm:$0x1 pattern:$0x73625140] %v1428_v6  ;;  %1487 = vst [vmem:[#allocation11 + $0x57] sm:$0x1] %v1457_v11 }
 0x184   :  { %1861 = vpow2.f32 %v1646_v13  ;;  %1488 = vst [vmem:[#allocation11 + $0x5f] sm:$0x1] %v1459_v32  ;;  %1491 = vst [vmem:[#allocation11 + $0x77] sm:$0x1] %v1458_v12  ;;  %v1639_v1 = vmul.f32 -0.5, %v1632_v17  ;;  %v1642_v60 = vmul.f32 -0.5, %v1635_v20 }
 0x185   :  { %v1652_v23 = vmul.f32 1.442695, %v1641_v18  ;;  %v1640_v62 = vmul.f32 -0.5, %v1633_v24  ;;  %1492 = vst [vmem:[#allocation11 + $0x7f] sm:$0x1] %v1460_v21  ;;  %v1643_v26 = vmul.f32 -0.5, %v1636_v22 }
 0x186   :  { %v1648_v25 = vmul.f32 1.442695, %v1639_v1  ;;  %v1654_v28 = vmul.f32 1.442695, %v1642_v60 }
 0x187   :  { %1863 = vpow2.f32 %v1652_v23  ;;  %v1650_v48 = vmul.f32 1.442695, %v1640_v62 }
 0x188   :  { %1994 = shalt.err (!%p1991_p2)
}
 0x189   :  { %s1995_s15 = scalar_lea.hbm %s2421_s5, 2048 }
 0x18a   :  { %p1996_p3 = scmp.ne.s32.totalorder %s2421_s5, %s1995_s15  ;;  %p1999_p4 = scmp.lt.u32.totalorder %s1995_s15, %s2421_s5 }
 0x18c   :  { %p2001_p5 = pnand %p1999_p4, %p1996_p3 }
 0x18e   :  { %2004 = shalt.err (!%p2001_p5)
}
 0x18f   :  { %1676 = dma.vmem_to_hbm [thread:$0]  %s1671_s10, 2048, %s2421_s5, [#allocation4], %s2042_s3, %s2042_s3, %s2043_s8   ;;  %1865 = vpow2.f32 %v1648_v25  ;;  %v1656_v8 = vmul.f32 1.442695, %v1643_v26  ;;  %v1860_v19 = vpop.eup %1859 }
 0x190   :  { %1867 = vpow2.f32 %v1654_v28  ;;  %1658 = vst.msk [vmem:[#allocation12] sm:$0xff] %vm1502_vm2, %v1860_v19  ;;  %v1862_v29 = vpop.eup %1861  ;;  %s2050_s1 = smov [#allocation12]  }
 0x191   :  { %1869 = vpow2.f32 %v1650_v48  ;;  %1659 = vst.msk [vmem:[#allocation12 + $0x8] sm:$0xff] %vm1502_vm2, %v1862_v29  ;;  %v1864_v52 = vpop.eup %1863  ;;  %s1682_s0 = sshll.u32 %s2050_s1, 4  ;;  %s1683_s0 = int_to_ptr.vmem [resolvable:$true] %s1682_s0 }
 0x192   :  { %1871 = vpow2.f32 %v1656_v8  ;;  %1662 = vst.msk [vmem:[#allocation12 + $0x20] sm:$0xff] %vm1502_vm2, %v1864_v52  ;;  %s2005_s5 = scalar_lea.vmem %s1683_s0, 896  ;;  %p2010_p7 = scmp.lt.s32.totalorder %s1683_s0, %s1683_s0 }
 0x193   :  { %p2006_p6 = scmp.ne.s32.totalorder %s1683_s0, %s2005_s5  ;;  %p2011_p8 = scmp.lt.s32.totalorder %s2005_s5, %s2005_s5 }
 0x195   :  { %p2012_p9 = por %p2011_p8, %p2010_p7 }
 0x197   :  { %p2013_p10 = pnand %p2012_p9, %p2006_p6 }
 0x199   :  { %v1866_v27 = vpop.eup %1865 }
 0x19a   :  { %v1868_v30 = vpop.eup %1867  ;;  %1660 = vst.msk [vmem:[#allocation12 + $0x10] sm:$0xff] %vm1502_vm2, %v1866_v27 }
 0x19b   :  { %v1870_v31 = vpop.eup %1869  ;;  %1663 = vst.msk [vmem:[#allocation12 + $0x28] sm:$0xff] %vm1502_vm2, %v1868_v30 }
 0x19c   :  { %v1872_v33 = vpop.eup %1871  ;;  %1661 = vst.msk [vmem:[#allocation12 + $0x18] sm:$0xff] %vm1502_vm2, %v1870_v31 }
 0x19d   :  { %1664 = vst.msk [vmem:[#allocation12 + $0x30] sm:$0xff] %vm1502_vm2, %v1872_v33 }
 0x19e   :  { %2016 = shalt.err (!%p2013_p10)
}
 0x19f   :  { %s2017_s23 = scalar_lea.hbm %s2422_s6, 896 }
 0x1a0   :  { %p2018_p11 = scmp.ne.s32.totalorder %s2422_s6, %s2017_s23  ;;  %p2021_p12 = scmp.lt.u32.totalorder %s2017_s23, %s2422_s6 }
 0x1a2   :  { %p2023_p13 = pnand %p2021_p12, %p2018_p11 }
 0x1a4   :  { %2026 = shalt.err (!%p2023_p13)
}
 0x1a5   :  { %1688 = dma.vmem_to_hbm [thread:$0]  %s1683_s0, 896, %s2422_s6, [#allocation13], %s2042_s3, %s2042_s3, %s2043_s8  }
 0x1a6   :  { %2033 = dma.done.wait [#allocation4], 2048  }
 0x1a7   :  { %2034 = vsyncadd [#allocation4], 4294965248 }
 0x1a8   :  { %2035 = dma.done.wait [#allocation13], 896  }
 0x1a9   :  { %2036 = vsyncadd [#allocation13], 4294966400 }
 0x1aa   :  { %1695 = vsyncpa [#allocation3], 1 }
 0x1ab   :  { %1696 = vsyncpa [#allocation6], 1 }
 0x1ac   :  { %1697 = vsyncpa [#allocation9], 1 }
 0x1ad   :  { %1698 = vsyncpa [#allocation4], 1 }
 0x1ae   :  { %1699 = vsyncpa [#allocation13], 1 }

</bundles_post_ra>
